<compile_context>
chip_gen: v6e
topology: v6e:2x2x1
jax: 0.10.0
libtpu: 0.0.40
codegen_flags: <defaults>
</compile_context>

<pallas_src>
import math
import functools

import jax
import jax.numpy as jnp
from jax.experimental import pallas as pl
from jax.experimental.pallas import tpu as pltpu


def _same_pad_kernel(x_ref, o_ref, *, pad_top, pad_bottom, pad_left, pad_right):
    # x_ref: (BLK, h_in, w_in)   o_ref: (BLK, h_out, w_out)
    blk, h_out, w_out = o_ref.shape
    _, h_in, w_in = x_ref.shape
    dt = o_ref.dtype

    # Zero only the halo strips — every output element is written exactly once.
    if pad_top > 0:
        o_ref[:, :pad_top, :] = jnp.zeros((blk, pad_top, w_out), dt)
    if pad_bottom > 0:
        o_ref[:, pad_top + h_in:, :] = jnp.zeros((blk, pad_bottom, w_out), dt)
    if pad_left > 0:
        o_ref[:, pad_top:pad_top + h_in, :pad_left] = jnp.zeros((blk, h_in, pad_left), dt)
    if pad_right > 0:
        o_ref[:, pad_top:pad_top + h_in, pad_left + w_in:] = jnp.zeros((blk, h_in, pad_right), dt)

    # Interior: single store of the whole input slab at its static offset.
    o_ref[:, pad_top:pad_top + h_in, pad_left:pad_left + w_in] = x_ref[...]


def _pick_block(nc, bytes_per_slab, target_bytes=4 << 20):
    """Pick how many (H, W) slabs to process per grid step (~multi-MiB tiles)."""
    blk = max(1, min(nc, target_bytes // max(1, bytes_per_slab)))
    if nc >= 2:
        # Keep at least 2 grid steps so v7x's two TensorCores both get work.
        blk = min(blk, pl.cdiv(nc, 2))
    # Prefer an exact divisor of nc (avoids ragged edge blocks), but don't
    # shrink below ~half the target block size for it.
    for d in range(blk, max(0, blk // 2 - 1), -1):
        if d >= 1 and nc % d == 0:
            return d
    return blk  # ragged last block; Pallas masks the out-of-range writeback


def same_pad_2d(x, kernel_size, stride):
    """TF 'SAME' padding, semantics identical to the PyTorch SamePad2d module."""
    ks = (kernel_size, kernel_size) if isinstance(kernel_size, int) else tuple(kernel_size)
    st = (stride, stride) if isinstance(stride, int) else tuple(stride)

    n, c, d2, d3 = x.shape
    # Faithful reproduction of the module's (slightly crossed) axis naming.
    in_width = d2
    in_height = d3
    out_width = math.ceil(float(in_width) / float(st[0]))
    out_height = math.ceil(float(in_height) / float(st[1]))
    pad_along_width = (out_width - 1) * st[0] + ks[0] - in_width
    pad_along_height = (out_height - 1) * st[1] + ks[1] - in_height
    pad_left = int(math.floor(pad_along_width / 2))
    pad_top = int(math.floor(pad_along_height / 2))
    pad_right = int(pad_along_width - pad_left)
    pad_bottom = int(pad_along_height - pad_top)

    # F.pad(x, (pad_left, pad_right, pad_top, pad_bottom)):
    #   last dim (d3) gets (pad_left, pad_right); dim 2 (d2) gets (pad_top, pad_bottom)
    h_out = d2 + pad_top + pad_bottom
    w_out = d3 + pad_left + pad_right

    if pad_left == 0 and pad_right == 0 and pad_top == 0 and pad_bottom == 0:
        return x  # nothing to pad — forward is identity

    # TODO(synk): negative 'SAME' padding (kernel_size < stride leftovers) would
    # require cropping; not supported here (the original module would crop via F.pad).
    assert min(pad_left, pad_right, pad_top, pad_bottom) >= 0

    nc = n * c
    itemsize = jnp.dtype(x.dtype).itemsize
    bytes_per_slab = itemsize * (d2 * d3 + h_out * w_out)
    blk = _pick_block(nc, bytes_per_slab)
    grid = pl.cdiv(nc, blk)

    # VMEM budget: double-buffered (input tile + output tile) plus headroom.
    # Cap at 32 MiB (<= scoped default on v6e/v7x; explicitly raises v5e's 16 MiB).
    tile_bytes = blk * bytes_per_slab
    vmem_limit = int(min(32 << 20, max(16 << 20, 2 * tile_bytes + (2 << 20))))

    kernel = functools.partial(
        _same_pad_kernel,
        pad_top=pad_top,
        pad_bottom=pad_bottom,
        pad_left=pad_left,
        pad_right=pad_right,
    )

    # Free reshape: NCHW is contiguous over the fused N*C axis.
    x3 = x.reshape(nc, d2, d3)

    out3 = pl.pallas_call(
        kernel,
        out_shape=jax.ShapeDtypeStruct((nc, h_out, w_out), x.dtype),
        grid_spec=pltpu.PrefetchScalarGridSpec(
            num_scalar_prefetch=0,
            grid=(grid,),
            in_specs=[pl.BlockSpec((blk, d2, d3), lambda i: (i, 0, 0))],
            out_specs=pl.BlockSpec((blk, h_out, w_out), lambda i: (i, 0, 0)),
        ),
        compiler_params=pltpu.CompilerParams(
            dimension_semantics=("parallel",),
            vmem_limit_bytes=vmem_limit,
        ),
    )(x3)

    return out3.reshape(n, c, h_out, w_out)


if __name__ == "__main__":
    key = jax.random.PRNGKey(0)
    x = jax.random.normal(key, (2, 4, 16, 16), dtype=jnp.float32)

    kernel_size = 3
    stride = 1

    out = same_pad_2d(x, kernel_size, stride)
    out = jax.block_until_ready(out)

    # Reference check (plain JAX glue, mirrors F.pad semantics exactly).
    ks, st = (3, 3), (1, 1)
    in_w, in_h = x.shape[2], x.shape[3]
    ow, oh = math.ceil(in_w / st[0]), math.ceil(in_h / st[1])
    paw = (ow - 1) * st[0] + ks[0] - in_w
    pah = (oh - 1) * st[1] + ks[1] - in_h
    pl_, pt = paw // 2, pah // 2
    pr, pb = paw - pl_, pah - pt
    ref = jnp.pad(x, ((0, 0), (0, 0), (pt, pb), (pl_, pr)))
    assert out.shape == ref.shape, (out.shape, ref.shape)
    assert jnp.array_equal(out, ref)

    print("KERNEL_OK")
</pallas_src>

<mosaic_0001>
module attributes {stable_mosaic.version = 11 : i64} {
  func.func @_same_pad_kernel(%arg0: i32, %arg1: memref<4x16x16xf32, #tpu.memory_space<vmem>>, %arg2: memref<4x18x18xf32, #tpu.memory_space<vmem>>) attributes {dimension_semantics = [#tpu.dimension_semantics<parallel>], iteration_bounds = array<i64: 2>, scalar_prefetch = 0 : i64, scratch_operands = 0 : i64, tpu.core_type = #tpu.core_type<tc>, window_params = [{transform_indices = @transform_0, window_bounds = array<i64: 4, 16, 16>}, {transform_indices = @transform_1, window_bounds = array<i64: 4, 18, 18>}]} {
    %cst = arith.constant 0.000000e+00 : f32
    %0 = vector.broadcast %cst : f32 to vector<4x1x18xf32>
    %c0 = arith.constant 0 : index
    %c0_0 = arith.constant 0 : index
    %c0_1 = arith.constant 0 : index
    %1 = vector.load %arg2[%c0, %c0_0, %c0_1] : memref<4x18x18xf32, #tpu.memory_space<vmem>>, vector<4x1x18xf32>
    tpu.vector_store %arg2[%c0, %c0_0, %c0_1], %0 {strides = array<i32>} : memref<4x18x18xf32, #tpu.memory_space<vmem>>, vector<4x1x18xf32>,
    %cst_2 = arith.constant 0.000000e+00 : f32
    %2 = vector.broadcast %cst_2 : f32 to vector<4x1x18xf32>
    %c0_3 = arith.constant 0 : index
    %c17 = arith.constant 17 : index
    %c0_4 = arith.constant 0 : index
    %3 = vector.load %arg2[%c0_3, %c17, %c0_4] : memref<4x18x18xf32, #tpu.memory_space<vmem>>, vector<4x1x18xf32>
    tpu.vector_store %arg2[%c0_3, %c17, %c0_4], %2 {strides = array<i32>} : memref<4x18x18xf32, #tpu.memory_space<vmem>>, vector<4x1x18xf32>,
    %cst_5 = arith.constant 0.000000e+00 : f32
    %4 = vector.broadcast %cst_5 : f32 to vector<4x16x1xf32>
    %c0_6 = arith.constant 0 : index
    %c1 = arith.constant 1 : index
    %c0_7 = arith.constant 0 : index
    %5 = vector.load %arg2[%c0_6, %c1, %c0_7] : memref<4x18x18xf32, #tpu.memory_space<vmem>>, vector<4x16x1xf32>
    tpu.vector_store %arg2[%c0_6, %c1, %c0_7], %4 {strides = array<i32>} : memref<4x18x18xf32, #tpu.memory_space<vmem>>, vector<4x16x1xf32>,
    %cst_8 = arith.constant 0.000000e+00 : f32
    %6 = vector.broadcast %cst_8 : f32 to vector<4x16x1xf32>
    %c0_9 = arith.constant 0 : index
    %c1_10 = arith.constant 1 : index
    %c17_11 = arith.constant 17 : index
    %7 = vector.load %arg2[%c0_9, %c1_10, %c17_11] : memref<4x18x18xf32, #tpu.memory_space<vmem>>, vector<4x16x1xf32>
    tpu.vector_store %arg2[%c0_9, %c1_10, %c17_11], %6 {strides = array<i32>} : memref<4x18x18xf32, #tpu.memory_space<vmem>>, vector<4x16x1xf32>,
    %c0_12 = arith.constant 0 : index
    %c0_13 = arith.constant 0 : index
    %c0_14 = arith.constant 0 : index
    %8 = vector.load %arg1[%c0_12, %c0_13, %c0_14] : memref<4x16x16xf32, #tpu.memory_space<vmem>>, vector<4x16x16xf32>
    %c0_15 = arith.constant 0 : index
    %c1_16 = arith.constant 1 : index
    %c1_17 = arith.constant 1 : index
    %9 = vector.load %arg2[%c0_15, %c1_16, %c1_17] : memref<4x18x18xf32, #tpu.memory_space<vmem>>, vector<4x16x16xf32>
    tpu.vector_store %arg2[%c0_15, %c1_16, %c1_17], %8 {strides = array<i32>} : memref<4x18x18xf32, #tpu.memory_space<vmem>>, vector<4x16x16xf32>,
    return
  }
  func.func @transform_0(%arg0: i32) -> (i32, i32, i32) {
    %c0_i32 = arith.constant 0 : i32
    %c0_i32_0 = arith.constant 0 : i32
    %c0_i32_1 = arith.constant 0 : i32
    return %arg0, %c0_i32, %c0_i32_0 : i32, i32, i32
  }
  func.func @transform_1(%arg0: i32) -> (i32, i32, i32) {
    %c0_i32 = arith.constant 0 : i32
    %c0_i32_0 = arith.constant 0 : i32
    %c0_i32_1 = arith.constant 0 : i32
    return %arg0, %c0_i32, %c0_i32_0 : i32, i32, i32
  }
}

</mosaic_0001>

<bundles_post_ra>
// kernel: tpu_custom_call.1
= control target key start
LH: loop header
LB: loop body
LE: loop exit
PB: predicated region body
PF: predicated region fallthrough
CT: control target
= control target key end

     0   :  { %6 = vsyncpa [#allocation3], 0  ;;  %s610_s0 = inlined_call_operand.hbm [shape: f32[8,16,16], index: 0, kind: input, shape index: {}]   ;;  %s611_s1 = inlined_call_operand.vmem [shape: f32[8,18,18], index: 1, kind: output, shape index: {}]  }
   0x1   :  { %8 = vsyncpa [#allocation3 + $0x1], 0  ;;  %s426_s6 = smov 0   ;;  %s428_s7 = smov 0  }
   0x2   :  { %s430_s8 = smov 0   ;;  %s432_s9 = smov 0  }
   0x3 LB: > { %s287_s10 = sadd.s32 4294967295, %s409_s9   ;;  %s446_s11 = sadd.s32 1, %s409_s9   ;;  %s409_s9 = sphi %s432_s9, %s620_s9   ;;  %s405_s8 = sphi %s430_s8, %s619_s8   ;;  %s401_s7 = sphi %s428_s7, %s618_s7   ;;  %s397_s6 = sphi %s426_s6, %s617_s6  }
   0x4   : > { %s18_s12 = ssub.s32 %s409_s9, %s446_s11  ;;  %s21_s13 = sadd.s32 1, %s405_s8 }
   0x5   : > { %p19_p0 = scmp.eq.s32.totalorder %s18_s12, 0  ;;  %p28_p1 = scmp.ne.s32.totalorder %s405_s8, %s401_s7 }
   0x6   : > { %p29_p2 = scmp.eq.s32.totalorder %s409_s9, 0  ;;  %p34_p3 = scmp.ne.s32.totalorder %s401_s7, %s397_s6 }
   0x7   : > { %s456_s14 = scalar_select %p19_p0, %s405_s8, %s21_s13  }
   0x8   : > { %p30_p4 = por %p29_p2, %p28_p1  ;;  %p35_p5 = scmp.eq.s32.totalorder %s287_s10, 0 }
   0x9   : > { %p310_p6 = scmp.lt.s32.totalorder %s409_s9, 2  ;;  %s84_s16 = sand.u32 1, %s405_s8  }
   0xa   : > { %p461_p7 = por %p35_p5, %p34_p3  ;;  %s291_s17 = sshll.u32 %s84_s16, 6 }
   0xb   : > { %s302_s18 = sshll.u32 %s409_s9, 10  ;;  %s88_s22 = scalar_lea.vmem [#allocation2], %s291_s17 }
   0xc   : > { %s613_s15 = scalar_select %p461_p7, 1, 0 }
   0xd   : > { %s470_s21 = scalar_lea.hbm %s610_s0, %s302_s18  ;;  %s96_s23 = sshll.u32 %s88_s22, 4  ;;  %s472_s23 = int_to_ptr.vmem [resolvable:$true] %s96_s23 }
   0xe   : > { %p474_p8 = pnand %p310_p6, %p30_p4  ;;  %s479_s25 = scalar_lea.sflag [#allocation3], %s84_s16 }
   0xf   : > { %s347_s26 = scalar_lea.hbm %s470_s21, 1024  ;;  %s352_s29 = scalar_lea.hbm %s610_s0, 2048 }
  0x10   : > { %p348_p10 = scmp.ne.s32.totalorder %s470_s21, %s347_s26  ;;  %p349_p11 = pneg %p474_p8 }
  0x11   : > { %p353_p0 = scmp.lt.s32.totalorder %s470_s21, %s610_s0  ;;  %p354_p1 = scmp.lt.s32.totalorder %s352_s29, %s347_s26 }
  0x12   : > { %p350_p12 = pnand %p349_p11, %p348_p10 }
  0x13   : > { %p355_p2 = por %p354_p1, %p353_p0 }
  0x14   : > { %p351_p13 = pneg %p350_p12 }
  0x16   : > { %p356_p3 = pnand %p355_p2, %p351_p13 }
  0x18   : > { %359 = shalt.err (!%p356_p3)
}
  0x19   : > { %s360_s3 = scalar_lea.vmem %s472_s23, 1024  ;;  %s411_s4 = smov [#allocation2]  }
  0x1a   : > { %p361_p4 = scmp.ne.s32.totalorder %s472_s23, %s360_s3  ;;  %s365_s5 = sshll.u32 %s411_s4, 4  ;;  %s366_s5 = int_to_ptr.vmem [resolvable:$false] %s365_s5 }
  0x1b   : > { %s367_s6 = scalar_lea.vmem %s366_s5, 2048  ;;  %p368_p10 = scmp.lt.s32.totalorder %s472_s23, %s366_s5 }
  0x1c   : > { %p363_p5 = pnand %p361_p4, %p349_p11  ;;  %p369_p12 = scmp.lt.s32.totalorder %s367_s6, %s360_s3 }
  0x1e   : > { %p364_p6 = pneg %p363_p5  ;;  %p370_p9 = por %p369_p12, %p368_p10 }
  0x20   : > { %p371_p7 = pnand %p370_p9, %p364_p6 }
  0x22   : > { %374 = shalt.err (!%p371_p7)
}
  0x23   : > { %s412_s12 = smov 128   ;;  %s413_s13 = smov 8  }
  0x24   : > { %309 = dma.hbm_to_vmem [thread:$0]  (!%p474_p8), %s470_s21, 1024, %s472_s23, %s479_s25, %s412_s12, %s412_s12, %s413_s13  }
  0x25   : > { %p104_p11 = scmp.lt.s32.totalorder %s409_s9, 3  ;;  %p615_p13 = scmp.ge.s32.totalorder %s409_s9, 1 }
  0x27   : > { %p105_p0 = pnand %p615_p13, %p104_p11 }
  0x28   : > { %s110_s16 = sand.u32 (!%p105_p0), 1, %s401_s7   ;;  %p616_p7 = scmp.ne.s32.totalorder (!%p105_p0), %s613_s15, 0 }
  0x29   : > { %108 = sbr.rel (%p105_p0) target bundleno = 177 (0xb1), region = 24  ;;  %s296_s17 = sshll.u32 (!%p105_p0), %s110_s16, 6 }
  0x2a   : > { %s111_s18 = scalar_lea.sflag (!%p105_p0), [#allocation3], %s110_s16  ;;  %s504_s19 = scalar_lea.vmem (!%p105_p0), [#allocation2], %s296_s17 }
  0x2e   : > { %392 = dma.done.wait (%p616_p7), %s111_s18, 1024  }
  0x2f   : > { %394 = vsyncadd (%p616_p7), %s111_s18, 4294966272  ;;  %s297_s20 = sshll.u32 %s287_s10, 2  ;;  %vm142_vm0 = vcmask 139264   ;;  %vm151_vm1 = vcmask 7168   ;;  %v171_v0 = vld [vmem:[%s504_s19 + $0x10] sm:$0xff]  ;;  %v169_v1 = vld [vmem:[%s504_s19] sm:$0xff] }
  0x30   : > { %p136_p8 = scmp.lt.s32.totalorder %s297_s20, 7  ;;  %v414_v2 = vmov 0.0   ;;  %s415_s9 = smov 1   ;;  %v172_v3 = vld [vmem:[%s504_s19 + $0x18] sm:$0xff]  ;;  %v170_v4 = vld [vmem:[%s504_s19 + $0x8] sm:$0xff]  ;;  %vm160_vm2 = vcmask 146568  }
  0x31   : > { %189 = vrot.lane.b32.xlu1 %v171_v0, %s415_s9  ;;  %185 = vrot.lane.b32.xlu0 %v169_v1, %s415_s9  ;;  %v174_v5 = vld [vmem:[%s504_s19 + $0x28] sm:$0xff]  ;;  %v173_v6 = vld [vmem:[%s504_s19 + $0x20] sm:$0xff]  ;;  %vm209_vm3 = vcmask 138248  }
  0x32   : > { %s622_s20 = smov (!%p136_p8, %s297_s20), 7  ;;  %v176_v7 = vld [vmem:[%s504_s19 + $0x38] sm:$0xff]  ;;  %v175_v8 = vld [vmem:[%s504_s19 + $0x30] sm:$0xff] }
  0x33   : > { %s303_s21 = smul.u32 24, %s622_s20 }
  0x35   : > { %s515_s24 = scalar_lea.vmem %s611_s1, %s303_s21  ;;  %191 = vrot.lane.b32.xlu1 %v172_v3, %s415_s9  ;;  %187 = vrot.lane.b32.xlu0 %v170_v4, %s415_s9 }
  0x36   : > { %143 = vst.msk [vmem:[%s515_s24] sm:$0x1] %vm142_vm0, %v414_v2  ;;  %147 = vst.msk [vmem:[%s515_s24 + $0x11] sm:$0x1] %vm142_vm0, %v414_v2 }
  0x37   : > { %152 = vst.msk [vmem:[%s515_s24 + $0x1] sm:$0xff] %vm151_vm1, %v414_v2  ;;  %153 = vst.msk [vmem:[%s515_s24 + $0x9] sm:$0xff] %vm151_vm1, %v414_v2 }
  0x38   : > { %144 = vst.msk [vmem:[%s515_s24 + $0x18] sm:$0x1] %vm142_vm0, %v414_v2  ;;  %148 = vst.msk [vmem:[%s515_s24 + $0x29] sm:$0x1] %vm142_vm0, %v414_v2 }
  0x39   : > { %154 = vst.msk [vmem:[%s515_s24 + $0x19] sm:$0xff] %vm151_vm1, %v414_v2  ;;  %155 = vst.msk [vmem:[%s515_s24 + $0x21] sm:$0xff] %vm151_vm1, %v414_v2  ;;  %195 = vrot.lane.b32.xlu1 %v174_v5, %s415_s9  ;;  %193 = vrot.lane.b32.xlu0 %v173_v6, %s415_s9 }
  0x3a   : > { %145 = vst.msk [vmem:[%s515_s24 + $0x30] sm:$0x1] %vm142_vm0, %v414_v2  ;;  %149 = vst.msk [vmem:[%s515_s24 + $0x41] sm:$0x1] %vm142_vm0, %v414_v2 }
  0x3b   : > { %156 = vst.msk [vmem:[%s515_s24 + $0x31] sm:$0xff] %vm151_vm1, %v414_v2  ;;  %157 = vst.msk [vmem:[%s515_s24 + $0x39] sm:$0xff] %vm151_vm1, %v414_v2 }
  0x3c   : > { %146 = vst.msk [vmem:[%s515_s24 + $0x48] sm:$0x1] %vm142_vm0, %v414_v2  ;;  %150 = vst.msk [vmem:[%s515_s24 + $0x59] sm:$0x1] %vm142_vm0, %v414_v2 }
  0x3d   : > { %158 = vst.msk [vmem:[%s515_s24 + $0x49] sm:$0xff] %vm151_vm1, %v414_v2  ;;  %159 = vst.msk [vmem:[%s515_s24 + $0x51] sm:$0xff] %vm151_vm1, %v414_v2  ;;  %199 = vrot.lane.b32.xlu1 %v176_v7, %s415_s9  ;;  %197 = vrot.lane.b32.xlu0 %v175_v8, %s415_s9 }
  0x3e   : > { %161 = vst.msk [vmem:[%s515_s24 + $0x1] sm:$0xff] %vm160_vm2, %v414_v2  ;;  %162 = vst.msk [vmem:[%s515_s24 + $0x9] sm:$0xff] %vm160_vm2, %v414_v2 }
  0x3f   : > { %163 = vst.msk [vmem:[%s515_s24 + $0x19] sm:$0xff] %vm160_vm2, %v414_v2  ;;  %164 = vst.msk [vmem:[%s515_s24 + $0x21] sm:$0xff] %vm160_vm2, %v414_v2 }
  0x40   : > { %165 = vst.msk [vmem:[%s515_s24 + $0x31] sm:$0xff] %vm160_vm2, %v414_v2  ;;  %166 = vst.msk [vmem:[%s515_s24 + $0x39] sm:$0xff] %vm160_vm2, %v414_v2 }
  0x41   : > { %167 = vst.msk [vmem:[%s515_s24 + $0x49] sm:$0xff] %vm160_vm2, %v414_v2  ;;  %168 = vst.msk [vmem:[%s515_s24 + $0x51] sm:$0xff] %vm160_vm2, %v414_v2 }
  0xa3   : > { %v190_v9 = vpop.permute.xlu1 %189  ;;  %v186_v10 = vpop.permute.xlu0 %185 }
  0xa4   : > { %210 = vst.msk [vmem:[%s515_s24 + $0x1] sm:$0xff] %vm209_vm3, %v186_v10  ;;  %212 = vst.msk [vmem:[%s515_s24 + $0x19] sm:$0xff] %vm209_vm3, %v190_v9 }
  0xa7   : > { %v192_v11 = vpop.permute.xlu1 %191  ;;  %v188_v12 = vpop.permute.xlu0 %187 }
  0xa8   : > { %211 = vst.msk [vmem:[%s515_s24 + $0x9] sm:$0xff] %vm209_vm3, %v188_v12  ;;  %213 = vst.msk [vmem:[%s515_s24 + $0x21] sm:$0xff] %vm209_vm3, %v192_v11 }
  0xab   : > { %v196_v13 = vpop.permute.xlu1 %195  ;;  %v194_v14 = vpop.permute.xlu0 %193 }
  0xac   : > { %215 = vst.msk [vmem:[%s515_s24 + $0x39] sm:$0xff] %vm209_vm3, %v196_v13  ;;  %214 = vst.msk [vmem:[%s515_s24 + $0x31] sm:$0xff] %vm209_vm3, %v194_v14 }
  0xaf   : > { %v200_v15 = vpop.permute.xlu1 %199  ;;  %v198_v16 = vpop.permute.xlu0 %197 }
  0xb0   : > { %217 = vst.msk [vmem:[%s515_s24 + $0x51] sm:$0xff] %vm209_vm3, %v200_v15  ;;  %216 = vst.msk [vmem:[%s515_s24 + $0x49] sm:$0xff] %vm209_vm3, %v198_v16 }
  0xb1 PF: > { %p11_p9 = scmp.ge.s32.totalorder %s446_s11, 4   ;;  %s617_s6 = smov %s401_s7 }
  0xb2   : > { %s618_s7 = smov %s405_s8  ;;  %s619_s8 = smov %s456_s14 }
  0xb3   : > { %s620_s9 = smov %s446_s11  ;;  %13 = sbr.rel (!%p11_p9) target bundleno = 3 (0x3), region = 64 }
  0xb8   :  { %242 = vsyncpa [#allocation3], 1 }
  0xb9   :  { %244 = vsyncpa [#allocation3 + $0x1], 1 }

</bundles_post_ra>
